<compile_context>
chip_gen: v6e
topology: v6e:2x2x1
jax: 0.10.0
libtpu: 0.0.40
codegen_flags: <defaults>
</compile_context>

<pallas_src>
import jax
import jax.numpy as jnp
from jax.experimental import pallas as pl
from jax.experimental.pallas import tpu as pltpu

MU = 0.1
LANES = 128
SUBLANES = 8


def _round_up(x, m):
    return ((x + m - 1) // m) * m


def _padded_bytes(shape, itemsize=4):
    """Bytes a block occupies in VMEM after (8,128) sublane/lane padding."""
    if len(shape) == 1:
        r, c = 1, shape[0]
    else:
        r, c = shape[-2], shape[-1]
    lead = 1
    for d in shape[:-2]:
        lead *= d
    return lead * _round_up(max(r, 1), SUBLANES) * _round_up(max(c, 1), LANES) * itemsize


def myloss_kernel(yt_ref, yp_ref, w1_ref, w2c_ref, out_ref, acc_ref):
    step = pl.program_id(0)
    tb = yt_ref.shape[0]

    @pl.when(step == 0)
    def _init():
        acc_ref[...] = jnp.zeros_like(acc_ref)

    # Hot loop: pure VPU. Lane-dense (tb, 128) tiles; fold sublane-groups of 8
    # into the resident (8,128) accumulator (reshape is tile-aligned -> free).
    diff = yt_ref[...] - yp_ref[...]
    sq = diff * diff
    acc_ref[...] += jnp.sum(sq.reshape(tb // SUBLANES, SUBLANES, LANES), axis=0)

    # Epilogue: single cross-lane/sublane reduce, weight group-lasso terms
    # (w1/w2c are VMEM-resident via constant index_maps), one output store.
    @pl.when(step == pl.num_programs(0) - 1)
    def _finalize():
        term1 = jnp.sum(acc_ref[...])

        w1 = w1_ref[...]
        term2 = jnp.sum(jnp.sqrt(jnp.sum(w1 * w1, axis=0, keepdims=True)))

        w2c = w2c_ref[...]  # already sliced to the first n_output columns
        term3 = jnp.sum(jnp.sqrt(jnp.sum(w2c * w2c, axis=0, keepdims=True)))

        out_ref[...] = (term1 + MU * (term2 + term3)).reshape(1, 1)


def _lane_dense_slab(y, padded_rows):
    """Flatten to a zero-padded (padded_rows, 128) f32 slab."""
    flat = y.reshape(-1)
    pad = padded_rows * LANES - flat.shape[0]
    if pad:
        flat = jnp.pad(flat, (0, pad))
    return flat.reshape(padded_rows, LANES)


def my_loss(y_true, y_pred, w1, w2, *, target_tile_rows=2048):
    batch, n_output = y_true.shape
    n_out = w2.shape[0]
    # PyTorch quirk reproduced: the term3 loop runs over w2.weight.shape[0] but
    # indexes COLUMNS, so only the first n_output columns of w2 contribute.
    w2c = w2[:, :n_out]

    # ---- lane-dense tiling over the flattened (batch * n_output) elements ----
    total = batch * n_output
    rows = -(-total // LANES)                       # ceil
    rows8 = _round_up(max(rows, 1), SUBLANES)
    tb = min(_round_up(target_tile_rows, SUBLANES), rows8)
    padded_rows = _round_up(rows8, tb)              # pad with zero rows (no fallback)
    num_tiles = padded_rows // tb

    yt = _lane_dense_slab(y_true.astype(jnp.float32), padded_rows)
    yp = _lane_dense_slab(y_pred.astype(jnp.float32), padded_rows)

    # ---- VMEM footprint (lane/sublane-padding aware) ----
    f32 = 4
    tile_bytes = tb * LANES * f32
    footprint = (2 * 2 * tile_bytes                           # 2 streamed inputs, double-buffered
                 + 2 * _padded_bytes(w1.shape)                # resident w1 (count x2 conservatively)
                 + 2 * _padded_bytes(w2c.shape)               # resident w2c
                 + SUBLANES * LANES * f32                     # (8,128) accumulator scratch
                 + SUBLANES * LANES * f32)                    # padded (1,1) output block
    # 2x headroom, floor 4 MiB, cap 24 MiB (safe on v7x: 32 MiB scoped / 64 MiB phys).
    vmem_limit = int(min(24 << 20, max(2 * footprint, 4 << 20)))

    cost = pl.CostEstimate(
        flops=3 * (2 * padded_rows * LANES) + 3 * w1.size + 3 * w2c.size,
        transcendentals=int(w1.shape[1] + w2c.shape[1]),      # the per-column sqrt's
        bytes_accessed=f32 * (2 * padded_rows * LANES + w1.size + w2c.size) + f32,
    )

    out = pl.pallas_call(
        myloss_kernel,
        out_shape=jax.ShapeDtypeStruct((1, 1), jnp.float32),
        grid_spec=pltpu.PrefetchScalarGridSpec(
            num_scalar_prefetch=0,
            grid=(num_tiles,),
            in_specs=[
                pl.BlockSpec((tb, LANES), lambda i: (i, 0)),   # y_true slab tile
                pl.BlockSpec((tb, LANES), lambda i: (i, 0)),   # y_pred slab tile
                pl.BlockSpec(w1.shape, lambda i: (0, 0)),      # resident
                pl.BlockSpec(w2c.shape, lambda i: (0, 0)),     # resident
            ],
            out_specs=pl.BlockSpec((1, 1), lambda i: (0, 0)),  # written once, final step
            scratch_shapes=[pltpu.VMEM((SUBLANES, LANES), jnp.float32)],
        ),
        compiler_params=pltpu.CompilerParams(
            # batch axis carries the term1 accumulator -> "arbitrary"
            dimension_semantics=("arbitrary",),
            vmem_limit_bytes=vmem_limit,
        ),
        cost_estimate=cost,
    )(yt, yp, w1, w2c)
    return out[0, 0]


def rvflnn_forward(x, w1, b1, w2, b2):
    # plain-JAX glue: RVFLNN forward with direct link (produces y_pred)
    h = jax.nn.relu(x @ w1.T + b1)
    hx = jnp.concatenate([h, x], axis=1)
    return hx @ w2.T + b2


def reference_loss(y_true, y_pred, w1, w2):
    term1 = jnp.sum((y_true - y_pred) ** 2)
    term2 = jnp.sum(jnp.sqrt(jnp.sum(w1 * w1, axis=0)))
    n_out = w2.shape[0]
    term3 = jnp.sum(jnp.sqrt(jnp.sum(w2[:, :n_out] ** 2, axis=0)))
    return term1 + MU * (term2 + term3)


if __name__ == "__main__":
    # small shapes consistent with RVFLNN(n_input, n_output, n_hid); batch matches
    # the original DataLoader batch_size=64.
    batch, n_input, n_hid, n_output = 64, 8, 32, 2

    key = jax.random.PRNGKey(0)
    k = jax.random.split(key, 6)
    x = jax.random.uniform(k[0], (batch, n_input), dtype=jnp.float32)
    y_true = jax.random.uniform(k[1], (batch, n_output), dtype=jnp.float32)

    # deterministic parameter init (PyTorch Linear shapes: (out_features, in_features))
    w1 = 0.1 * jax.random.normal(k[2], (n_hid, n_input), dtype=jnp.float32)
    b1 = 0.1 * jax.random.normal(k[3], (n_hid,), dtype=jnp.float32)
    w2 = 0.1 * jax.random.normal(k[4], (n_output, n_input + n_hid), dtype=jnp.float32)
    b2 = 0.1 * jax.random.normal(k[5], (n_output,), dtype=jnp.float32)

    # Fuse forward + loss under one jit so y_pred does not make an extra HBM
    # round trip between the XLA matmul and the loss kernel's consumers.
    fused = jax.jit(
        lambda x, yt, w1, b1, w2, b2: my_loss(yt, rvflnn_forward(x, w1, b1, w2, b2), w1, w2)
    )
    loss = fused(x, y_true, w1, b1, w2, b2)
    jax.block_until_ready(loss)

    y_pred = rvflnn_forward(x, w1, b1, w2, b2)
    ref = reference_loss(y_true, y_pred, w1, w2)
    assert jnp.allclose(loss, ref, rtol=1e-5, atol=1e-5), (loss, ref)

    # Also exercise the multi-step pipelined path (grid > 1) with a batch that
    # does NOT divide evenly (zero-row padding path) and a small tile.
    batch2 = 2000
    k2 = jax.random.split(jax.random.PRNGKey(1), 2)
    x2 = jax.random.uniform(k2[0], (batch2, n_input), dtype=jnp.float32)
    yt2 = jax.random.uniform(k2[1], (batch2, n_output), dtype=jnp.float32)
    yp2 = rvflnn_forward(x2, w1, b1, w2, b2)
    loss2 = my_loss(yt2, yp2, w1, w2, target_tile_rows=8)
    jax.block_until_ready(loss2)
    ref2 = reference_loss(yt2, yp2, w1, w2)
    assert jnp.allclose(loss2, ref2, rtol=1e-5, atol=1e-4), (loss2, ref2)

    print("KERNEL_OK")
</pallas_src>

<mosaic_0001>
module attributes {stable_mosaic.version = 11 : i64} {
  func.func @myloss_kernel(%arg0: i32, %arg1: memref<8x128xf32, #tpu.memory_space<vmem>>, %arg2: memref<8x128xf32, #tpu.memory_space<vmem>>, %arg3: memref<32x8xf32, #tpu.memory_space<vmem>>, %arg4: memref<2x2xf32, #tpu.memory_space<vmem>>, %arg5: memref<1x1xf32, #tpu.memory_space<vmem>>, %arg6: memref<8x128xf32, #tpu.memory_space<vmem>>) attributes {dimension_semantics = [#tpu.dimension_semantics<arbitrary>], iteration_bounds = array<i64: 1>, scalar_prefetch = 0 : i64, scratch_operands = 1 : i64, tpu.core_type = #tpu.core_type<tc>, window_params = [{transform_indices = @transform_0, window_bounds = array<i64: 8, 128>}, {transform_indices = @transform_1, window_bounds = array<i64: 8, 128>}, {pipeline_mode = #tpu.pipeline_mode<synchronous>, transform_indices = @transform_2, window_bounds = array<i64: 32, 8>}, {pipeline_mode = #tpu.pipeline_mode<synchronous>, transform_indices = @transform_3, window_bounds = array<i64: 2, 2>}, {pipeline_mode = #tpu.pipeline_mode<synchronous>, transform_indices = @transform_4, window_bounds = array<i64: 1, 1>}]} {
    %c0_i32 = arith.constant 0 : i32
    %0 = arith.cmpi eq, %arg0, %c0_i32 : i32
    %1 = arith.extui %0 : i1 to i32
    %c0_i32_0 = arith.constant 0 : i32
    %2 = arith.cmpi ne, %1, %c0_i32_0 : i32
    scf.if %2 {
      %cst_10 = arith.constant 0.000000e+00 : f32
      %15 = vector.broadcast %cst_10 : f32 to vector<8x128xf32>
      %c0_11 = arith.constant 0 : index
      %c0_12 = arith.constant 0 : index
      %16 = vector.load %arg6[%c0_11, %c0_12] : memref<8x128xf32, #tpu.memory_space<vmem>>, vector<8x128xf32>
      tpu.vector_store %arg6[%c0_11, %c0_12], %15 {strides = array<i32>} : memref<8x128xf32, #tpu.memory_space<vmem>>, vector<8x128xf32>,
    } else {
    }
    %c0 = arith.constant 0 : index
    %c0_1 = arith.constant 0 : index
    %3 = vector.load %arg1[%c0, %c0_1] : memref<8x128xf32, #tpu.memory_space<vmem>>, vector<8x128xf32>
    %c0_2 = arith.constant 0 : index
    %c0_3 = arith.constant 0 : index
    %4 = vector.load %arg2[%c0_2, %c0_3] : memref<8x128xf32, #tpu.memory_space<vmem>>, vector<8x128xf32>
    %5 = arith.subf %3, %4 : vector<8x128xf32>
    %6 = arith.mulf %5, %5 : vector<8x128xf32>
    %c0_4 = arith.constant 0 : index
    %c0_5 = arith.constant 0 : index
    %7 = vector.load %arg6[%c0_4, %c0_5] : memref<8x128xf32, #tpu.memory_space<vmem>>, vector<8x128xf32>
    %8 = vector.shape_cast %6 : vector<8x128xf32> to vector<1x8x128xf32>
    %cst = arith.constant dense<0.000000e+00> : vector<8x128xf32>
    %9 = vector.multi_reduction <add>, %8, %cst [0] : vector<1x8x128xf32> to vector<8x128xf32>
    %10 = arith.addf %7, %9 : vector<8x128xf32>
    %c0_6 = arith.constant 0 : index
    %c0_7 = arith.constant 0 : index
    %11 = vector.load %arg6[%c0_6, %c0_7] : memref<8x128xf32, #tpu.memory_space<vmem>>, vector<8x128xf32>
    tpu.vector_store %arg6[%c0_6, %c0_7], %10 {strides = array<i32>} : memref<8x128xf32, #tpu.memory_space<vmem>>, vector<8x128xf32>,
    %c0_i32_8 = arith.constant 0 : i32
    %12 = arith.cmpi eq, %arg0, %c0_i32_8 : i32
    %13 = arith.extui %12 : i1 to i32
    %c0_i32_9 = arith.constant 0 : i32
    %14 = arith.cmpi ne, %13, %c0_i32_9 : i32
    scf.if %14 {
      %c0_10 = arith.constant 0 : index
      %c0_11 = arith.constant 0 : index
      %15 = vector.load %arg6[%c0_10, %c0_11] : memref<8x128xf32, #tpu.memory_space<vmem>>, vector<8x128xf32>
      %16 = vector.shape_cast %15 : vector<8x128xf32> to vector<1x8x128xf32>
      %cst_12 = arith.constant dense<0.000000e+00> : vector<1xf32>
      %17 = vector.multi_reduction <add>, %16, %cst_12 [1, 2] : vector<1x8x128xf32> to vector<1xf32>
      %18 = vector.shape_cast %17 : vector<1xf32> to vector<1x1x1xf32>
      %19 = vector.extract %18[0, 0, 0] : f32 from vector<1x1x1xf32>
      %c0_13 = arith.constant 0 : index
      %c0_14 = arith.constant 0 : index
      %20 = vector.load %arg3[%c0_13, %c0_14] : memref<32x8xf32, #tpu.memory_space<vmem>>, vector<32x8xf32>
      %21 = arith.mulf %20, %20 : vector<32x8xf32>
      %cst_15 = arith.constant dense<0.000000e+00> : vector<8xf32>
      %22 = vector.multi_reduction <add>, %21, %cst_15 [0] : vector<32x8xf32> to vector<8xf32>
      %23 = vector.shape_cast %22 : vector<8xf32> to vector<1x8xf32>
      %24 = math.sqrt %23 : vector<1x8xf32>
      %25 = vector.shape_cast %24 : vector<1x8xf32> to vector<1x1x8xf32>
      %cst_16 = arith.constant dense<0.000000e+00> : vector<1xf32>
      %26 = vector.multi_reduction <add>, %25, %cst_16 [1, 2] : vector<1x1x8xf32> to vector<1xf32>
      %27 = vector.shape_cast %26 : vector<1xf32> to vector<1x1x1xf32>
      %28 = vector.extract %27[0, 0, 0] : f32 from vector<1x1x1xf32>
      %c0_17 = arith.constant 0 : index
      %c0_18 = arith.constant 0 : index
      %29 = vector.load %arg4[%c0_17, %c0_18] : memref<2x2xf32, #tpu.memory_space<vmem>>, vector<2x2xf32>
      %30 = arith.mulf %29, %29 : vector<2x2xf32>
      %cst_19 = arith.constant dense<0.000000e+00> : vector<2xf32>
      %31 = vector.multi_reduction <add>, %30, %cst_19 [0] : vector<2x2xf32> to vector<2xf32>
      %32 = vector.shape_cast %31 : vector<2xf32> to vector<1x2xf32>
      %33 = math.sqrt %32 : vector<1x2xf32>
      %34 = vector.shape_cast %33 : vector<1x2xf32> to vector<1x1x2xf32>
      %cst_20 = arith.constant dense<0.000000e+00> : vector<1xf32>
      %35 = vector.multi_reduction <add>, %34, %cst_20 [1, 2] : vector<1x1x2xf32> to vector<1xf32>
      %36 = vector.shape_cast %35 : vector<1xf32> to vector<1x1x1xf32>
      %37 = vector.extract %36[0, 0, 0] : f32 from vector<1x1x1xf32>
      %38 = arith.addf %28, %37 : f32
      %cst_21 = arith.constant 1.000000e-01 : f32
      %39 = arith.mulf %cst_21, %38 : f32
      %40 = arith.addf %19, %39 : f32
      %41 = vector.broadcast %40 : f32 to vector<1x1xf32>
      %c0_22 = arith.constant 0 : index
      %c0_23 = arith.constant 0 : index
      %42 = vector.load %arg5[%c0_22, %c0_23] : memref<1x1xf32, #tpu.memory_space<vmem>>, vector<1x1xf32>
      tpu.vector_store %arg5[%c0_22, %c0_23], %41 {strides = array<i32>} : memref<1x1xf32, #tpu.memory_space<vmem>>, vector<1x1xf32>,
    } else {
    }
    return
  }
  func.func @transform_0(%arg0: i32) -> (i32, i32) {
    %c0_i32 = arith.constant 0 : i32
    %c0_i32_0 = arith.constant 0 : i32
    return %arg0, %c0_i32 : i32, i32
  }
  func.func @transform_1(%arg0: i32) -> (i32, i32) {
    %c0_i32 = arith.constant 0 : i32
    %c0_i32_0 = arith.constant 0 : i32
    return %arg0, %c0_i32 : i32, i32
  }
  func.func @transform_2(%arg0: i32) -> (i32, i32) {
    %c0_i32 = arith.constant 0 : i32
    %c0_i32_0 = arith.constant 0 : i32
    %c0_i32_1 = arith.constant 0 : i32
    return %c0_i32, %c0_i32_0 : i32, i32
  }
  func.func @transform_3(%arg0: i32) -> (i32, i32) {
    %c0_i32 = arith.constant 0 : i32
    %c0_i32_0 = arith.constant 0 : i32
    %c0_i32_1 = arith.constant 0 : i32
    return %c0_i32, %c0_i32_0 : i32, i32
  }
  func.func @transform_4(%arg0: i32) -> (i32, i32) {
    %c0_i32 = arith.constant 0 : i32
    %c0_i32_0 = arith.constant 0 : i32
    %c0_i32_1 = arith.constant 0 : i32
    return %c0_i32, %c0_i32_0 : i32, i32
  }
}

</mosaic_0001>

<bundles_post_ra>
// kernel: _lambda_.1
= control target key start
LH: loop header
LB: loop body
LE: loop exit
PB: predicated region body
PF: predicated region fallthrough
CT: control target
= control target key end

     0   :  { %vm86_vm0 = vcmask 9216   ;;  %vm52_vm1 = vcmask 64512   ;;  %s219_s0 = inlined_call_operand.vmem [shape: f32[8,128], index: 0, kind: input, shape index: {}]   ;;  %s220_s1 = inlined_call_operand.vmem [shape: f32[8,128], index: 1, kind: input, shape index: {}]   ;;  %s221_s2 = inlined_call_operand.vmem [shape: f32[32,8], index: 2, kind: input, shape index: {}]   ;;  %s222_s3 = inlined_call_operand.vmem [shape: f32[2,2], index: 3, kind: input, shape index: {}]   ;;  %s223_s4 = inlined_call_operand.hbm [shape: f32[1,1], index: 4, kind: output, shape index: {}]  }
   0x1   :  { %v23_v0 = vld [vmem:[%s219_s0] sm:$0xff]  ;;  %v45_v6 = vld [vmem:[%s221_s2 + $0x8] sm:$0xff]  ;;  %v46_v7 = vld [vmem:[%s221_s2 + $0x10] sm:$0xff] }
   0x2   :  { %v24_v1 = vld [vmem:[%s220_s1] sm:$0xff]  ;;  %v47_v8 = vld [vmem:[%s221_s2 + $0x18] sm:$0xff]  ;;  %v49_v10 = vmul.f32 %v45_v6, %v45_v6  ;;  %v50_v11 = vmul.f32 %v46_v7, %v46_v7 }
   0x3   :  { %v84_v2 = vld [vmem:[%s222_s3] sm:$0x3]  ;;  %v25_v3 = vsub.f32 %v23_v0, %v24_v1 }
   0x4   :  { %v85_v4 = vmul.f32 %v84_v2, %v84_v2  ;;  %v44_v5 = vld [vmem:[%s221_s2] sm:$0xff] }
   0x5   :  { %v48_v9 = vmul.f32 %v44_v5, %v44_v5 }
   0x6   :  { %9 = vsyncpa [#allocation4], 0  ;;  %v26_v12 = vmul.f32 %v25_v3, %v25_v3  ;;  %v87_v13 = vsel %vm86_vm0, %v85_v4, 0.0  ;;  %v51_v14 = vmul.f32 %v47_v8, %v47_v8  ;;  %v54_v17 = vsel %vm52_vm1, %v49_v10, 0.0  ;;  %s165_s30 = smov [#allocation3]  }
   0x7   :  { %v88_v15 = vrot.slane %v87_v13, 4  ;;  %v53_v16 = vsel %vm52_vm1, %v48_v9, 0.0  ;;  %v56_v18 = vsel %vm52_vm1, %v50_v11, 0.0  ;;  %vm101_vm4 = vcmask 8192   ;;  %s124_s5 = sshll.u32 %s165_s30, 4  ;;  %s125_s5 = int_to_ptr.vmem [resolvable:$true] %s124_s5 }
   0x8   :  { %35 = vadd.xlane.f32.xlu0 %v26_v12  ;;  %v55_v19 = vadd.f32 %v54_v17, %v53_v16  ;;  %v58_v21 = vsel %vm52_vm1, %v51_v14, 0.0  ;;  %vm73_vm7 = vcmask 57344   ;;  %vm116_vm8 = vcmask 0   ;;  %s143_s7 = scalar_lea.vmem %s125_s5, 16  ;;  %s147_s8 = scalar_lea.vmem %s125_s5, 32 }
   0x9   :  { %v89_v20 = vadd.f32 %v88_v15, %v87_v13  ;;  %p144_p0 = scmp.ne.s32.totalorder %s125_s5, %s143_s7  ;;  %p148_p1 = scmp.lt.s32.totalorder %s125_s5, %s125_s5 }
   0xa   :  { %v57_v22 = vadd.f32 %v56_v18, %v55_v19  ;;  %p149_p2 = scmp.lt.s32.totalorder %s147_s8, %s143_s7 }
   0xb   :  { %v90_v23 = vrot.slane %v89_v20, 2 }
   0xc   :  { %v59_v24 = vadd.f32 %v58_v21, %v57_v22  ;;  %p150_p3 = por %p149_p2, %p148_p1 }
   0xd   :  { %v91_v25 = vadd.f32 %v90_v23, %v89_v20 }
   0xe   :  { %v60_v26 = vrot.slane %v59_v24, 4  ;;  %p151_p4 = pnand %p150_p3, %p144_p0 }
   0xf   :  { %v92_v27 = vrot.slane %v91_v25, 1 }
  0x10   :  { %v61_v28 = vadd.f32 %v60_v26, %v59_v24 }
  0x11   :  { %v93_v29 = vadd.f32 %v92_v27, %v91_v25 }
  0x12   :  { %v62_v30 = vrot.slane %v61_v28, 2 }
  0x13   :  { %139 = vrsqrt.f32 %v93_v29  ;;  %vm96_vm2 = vcmp.eq.f32.partialorder %v93_v29, inf  ;;  %v99_v35 = vand.u32 2147483648, %v93_v29  ;;  %vm98_vm3 = vcmp.eq.f32.partialorder %v93_v29, 0.0 }
  0x14   :  { %v63_v31 = vadd.f32 %v62_v30, %v61_v28 }
  0x16   :  { %v64_v32 = vrot.slane %v63_v31, 1 }
  0x18   :  { %v65_v33 = vadd.f32 %v64_v32, %v63_v31 }
  0x1a   :  { %141 = vrsqrt.f32 %v65_v33  ;;  %vm68_vm5 = vcmp.eq.f32.partialorder %v65_v33, inf  ;;  %v71_v41 = vand.u32 2147483648, %v65_v33  ;;  %vm70_vm6 = vcmp.eq.f32.partialorder %v65_v33, 0.0 }
  0x20   :  { %v140_v34 = vpop.eup %139 }
  0x21   :  { %v95_v36 = vmul.f32 %v140_v34, %v93_v29 }
  0x23   :  { %v97_v37 = vsel %vm96_vm2, %v93_v29, %v95_v36 }
  0x24   :  { %v100_v38 = vsel %vm98_vm3, %v99_v35, %v97_v37 }
  0x25   :  { %v102_v39 = vsel %vm101_vm4, %v100_v38, 0.0 }
  0x26   :  { %103 = vadd.xlane.f32.xlu1 %v102_v39 }
  0x27   :  { %v142_v40 = vpop.eup %141 }
  0x28   :  { %v67_v42 = vmul.f32 %v142_v40, %v65_v33 }
  0x2a   :  { %v69_v43 = vsel %vm68_vm5, %v65_v33, %v67_v42 }
  0x2b   :  { %v72_v44 = vsel %vm70_vm6, %v71_v41, %v69_v43 }
  0x2c   :  { %v74_v45 = vsel %vm73_vm7, %v72_v44, 0.0 }
  0x2d   :  { %75 = vadd.xlane.f32.xlu0 %v74_v45 }
  0x91   :  { %v36_v46 = vpop.xlane.xlu0 %35 }
  0x92   :  { %v37_v47 = vrot.slane %v36_v46, 4 }
  0x94   :  { %v38_v48 = vadd.f32 %v37_v47, %v36_v46 }
  0x96   :  { %v39_v49 = vrot.slane %v38_v48, 2 }
  0x98   :  { %v40_v50 = vadd.f32 %v39_v49, %v38_v48 }
  0x9a   :  { %v41_v51 = vrot.slane %v40_v50, 1 }
  0x9c   :  { %v42_v52 = vadd.f32 %v41_v51, %v40_v50 }
  0x9e   :  { %132 = vpush %v42_v52 }
  0xaf   :  { %v104_v53 = vpop.xlane.xlu1 %103 }
  0xb0   :  { %v105_v54 = vrot.slane %v104_v53, 4 }
  0xb2   :  { %v106_v55 = vadd.f32 %v105_v54, %v104_v53 }
  0xb4   :  { %v107_v56 = vrot.slane %v106_v55, 2 }
  0xb6   :  { %v76_v57 = vpop.xlane.xlu0 %75  ;;  %v108_v60 = vadd.f32 %v107_v56, %v106_v55 }
  0xb7   :  { %v77_v58 = vrot.slane %v76_v57, 4 }
  0xb8   :  { %v109_v63 = vrot.slane %v108_v60, 1 }
  0xb9   :  { %v78_v59 = vadd.f32 %v77_v58, %v76_v57 }
  0xba   :  { %v110_v2 = vadd.f32 %v109_v63, %v108_v60 }
  0xbb   :  { %v79_v61 = vrot.slane %v78_v59, 2 }
  0xbd   :  { %v80_v62 = vadd.f32 %v79_v61, %v78_v59 }
  0xbf   :  { %v81_v0 = vrot.slane %v80_v62, 1 }
  0xc1   :  { %v82_v1 = vadd.f32 %v81_v0, %v80_v62 }
  0xc3   :  { %134 = vpush %v82_v1 }
  0xc4   :  { %136 = vpush %v110_v2 }
  0xcf   :  { %s133_s2 = spop %132 }
  0xf4   :  { %s135_s3 = spop %134 }
  0xf5   :  { %s137_s27 = spop %136 }
  0xf6   :  { %s112_s28 = sadd.f32 %s137_s27, %s135_s3 }
  0xf8   :  { %s113_s29 = smul.f32 0.1, %s112_s28 }
  0xfa   :  { %s114_s6 = sadd.f32 %s133_s2, %s113_s29 }
  0xfc   :  { %v115_v3 = vstv %s114_s6 }
  0xfd   :  { %117 = vst.msk [vmem:[#allocation3] sm:$0x1] %vm116_vm8, %v115_v3 }
  0xfe   :  { %154 = shalt.err (!%p151_p4)
}
  0xff   :  { %127 = dma.vmem_to_hbm [thread:$0]  %s125_s5, 16, %s223_s4, [#allocation4]  }
 0x100   :  { %163 = dma.done.wait [#allocation4], 16  }
 0x101   :  { %164 = vsyncadd [#allocation4], 4294967280 }
 0x102   :  { %131 = vsyncpa [#allocation4], 1 }

</bundles_post_ra>
